<compile_context>
chip_gen: v6e
topology: v6e:2x2x1
jax: 0.10.0
libtpu: 0.0.40
codegen_flags: <defaults>
</compile_context>

<pallas_src>
import functools

import jax
import jax.numpy as jnp
from jax.experimental import pallas as pl
from jax.experimental.pallas import tpu as pltpu


_LANES = 128
_SUBLANES = 8


def _round_up(x, m):
    return ((x + m - 1) // m) * m


def _pointcoder_kernel(x_ref, scale_ref, ref_ref, o_ref, *, pixel, use_tanh):
    """Decode one (row_block, lane_block) tile.

    scale_ref / ref_ref are (1, lane_block) rows broadcast over the sublane
    axis -- zero integer iota/mod/div work in the body (pure VPU/EUP).
    """
    rel = x_ref[...].astype(jnp.float32)
    d = rel * scale_ref[...]                    # (R, L) * (1, L) sublane-broadcast
    if use_tanh:
        d = jnp.tanh(d) * pixel                 # tanh -> EUP slot
    o_ref[...] = jnp.clip(d + ref_ref[...], -1.0, 1.0).astype(o_ref.dtype)


def _pick_blocks(num_rows, num_lanes, itemsize, target_block_bytes):
    """Pick (row_block, lane_block).

    lane_block: multiple of 128 (or the full lane extent) -> lane-dense stores.
    row_block : multiple of 8 (or the full row extent); capped so the
    'parallel' grid has >= 2 steps when there is enough work (v7x has 2 TCs).
    """
    budget_elems = max(_SUBLANES * _LANES,
                       target_block_bytes // max(1, itemsize))
    lane_block = min(num_lanes,
                     max(_LANES, ((budget_elems // _SUBLANES) // _LANES) * _LANES))
    rows_budget = max(1, budget_elems // lane_block)
    lane_steps = pl.cdiv(num_lanes, lane_block)
    if lane_steps < 2 and num_rows >= 2 * _SUBLANES:
        # Keep >= 2 grid steps so both v7x TensorCores get work.
        rows_budget = min(rows_budget, pl.cdiv(num_rows, 2))
    if rows_budget >= num_rows:
        row_block = num_rows                     # full extent: always legal
    else:
        row_block = max(_SUBLANES, (rows_budget // _SUBLANES) * _SUBLANES)
    return row_block, lane_block


def point_coder_forward(pts, *, input_size, patch_count,
                        weights=(1.0, 1.0, 1.0), tanh=True,
                        target_block_bytes=2 << 20):
    """Equivalent of PointCoder.forward(pts) (model_offset=None).

    pts: (B, patch_count, 2); returns pred_boxes with the same shape/dtype.
    """
    del input_size  # only used by get_offsets(), not by forward()
    B, N, C = pts.shape
    assert N == patch_count and C == 2
    # reference does `wx, wy = self.weights` (take the first two entries of the
    # default 3-tuple).
    wx, wy = float(weights[0]), float(weights[1])
    dtype = pts.dtype
    itemsize = jnp.dtype(dtype).itemsize

    L = 2 * N
    L_pad = _round_up(L, _LANES)
    pixel = 1.0 / patch_count

    # Per-lane constants over the interleaved [x0, y0, x1, y1, ...] layout.
    lane_idx = jnp.arange(L_pad, dtype=jnp.int32)
    patch_f = (lane_idx >> 1).astype(jnp.float32)      # patch index i
    is_x = (lane_idx & 1) == 0                          # even lane -> x coord
    # anchor: x_i = -1 + (0.5 + i) * (2 / patch_count)
    # TODO(synk): reference `_generate_anchor` builds a single-column anchor yet
    # decode reads anchor[:, 1]; ref_y here reuses the same per-patch value as
    # ref_x (the only anchor value the module ever defines).
    ref_row = (-1.0 + (patch_f + 0.5) * (2.0 / patch_count)).reshape(1, L_pad)
    if tanh:
        scale_row = jnp.where(is_x, 1.0 / wx, 1.0 / wy)
    else:
        scale_row = jnp.where(is_x, pixel / wx, pixel / wy)
    scale_row = scale_row.astype(jnp.float32).reshape(1, L_pad)

    x2d = pts.reshape(B, L)                              # free contiguous reshape
    if L_pad != L:
        x2d = jnp.pad(x2d, ((0, 0), (0, L_pad - L)))     # lane-dense padding

    row_block, lane_block = _pick_blocks(B, L_pad, itemsize, target_block_bytes)
    grid = (pl.cdiv(B, row_block), pl.cdiv(L_pad, lane_block))

    kernel = functools.partial(_pointcoder_kernel, pixel=pixel, use_tanh=tanh)

    T = B * L_pad
    cost = pl.CostEstimate(
        flops=5 * T,
        transcendentals=T if tanh else 0,
        bytes_accessed=2 * T * itemsize + 2 * L_pad * 4)

    out = pl.pallas_call(
        kernel,
        out_shape=jax.ShapeDtypeStruct((B, L_pad), dtype),
        grid=grid,
        in_specs=[
            pl.BlockSpec((row_block, lane_block), lambda i, j: (i, j)),
            pl.BlockSpec((1, lane_block), lambda i, j: (0, j)),   # scale row
            pl.BlockSpec((1, lane_block), lambda i, j: (0, j)),   # anchor row
        ],
        out_specs=pl.BlockSpec((row_block, lane_block), lambda i, j: (i, j)),
        compiler_params=pltpu.CompilerParams(
            dimension_semantics=("parallel", "parallel")),
        cost_estimate=cost,
    )(x2d, scale_row, ref_row)

    if L_pad != L:
        out = out[:, :L]
    return out.reshape(B, N, 2)


def _reference_forward(pts, *, patch_count, weights=(1.0, 1.0, 1.0), tanh=True):
    """Pure-JAX reference mirroring the PyTorch decode()."""
    wx, wy = float(weights[0]), float(weights[1])
    pixel = 1.0 / patch_count
    idx = jnp.arange(patch_count, dtype=jnp.float32)
    anchor_x = -1.0 + (0.5 + idx) * (2.0 / patch_count)      # (N,)
    ref_x = anchor_x[None, :]
    ref_y = anchor_x[None, :]
    x = pts.astype(jnp.float32)
    if tanh:
        dx = jnp.tanh(x[:, :, 0] / wx) * pixel
        dy = jnp.tanh(x[:, :, 1] / wy) * pixel
    else:
        dx = x[:, :, 0] * pixel / wx
        dy = x[:, :, 1] * pixel / wy
    px = jnp.clip(dx + ref_x, -1.0, 1.0)
    py = jnp.clip(dy + ref_y, -1.0, 1.0)
    return jnp.stack([px, py], axis=-1).astype(pts.dtype)


if __name__ == "__main__":
    key = jax.random.PRNGKey(0)
    k1, k2, k3, k4 = jax.random.split(key, 4)

    # 1) Small case (2N=16 -> padded lane-dense layout), tanh path.
    b1, n1 = 2, 8
    pts1 = jax.random.normal(k1, (b1, n1, 2), dtype=jnp.float32)
    out1 = jax.block_until_ready(
        point_coder_forward(pts1, input_size=16, patch_count=n1,
                            weights=(1.0, 1.0, 1.0), tanh=True))
    ref1 = _reference_forward(pts1, patch_count=n1,
                              weights=(1.0, 1.0, 1.0), tanh=True)
    assert out1.shape == pts1.shape and out1.dtype == pts1.dtype
    assert jnp.allclose(out1, ref1, atol=1e-6, rtol=1e-5)

    # 2) 2N=392 -> padded to 512 lanes, unequal weights, non-tanh path,
    #    row-tiled grid (B=16 -> two row blocks for megacore).
    b2, n2 = 16, 196
    pts2 = jax.random.normal(k2, (b2, n2, 2), dtype=jnp.float32)
    out2 = jax.block_until_ready(
        point_coder_forward(pts2, input_size=14, patch_count=n2,
                            weights=(2.0, 0.5, 1.0), tanh=False))
    ref2 = _reference_forward(pts2, patch_count=n2,
                              weights=(2.0, 0.5, 1.0), tanh=False)
    assert jnp.allclose(out2, ref2, atol=1e-6, rtol=1e-5)

    # 3) Force grid > 1 along rows (tiled, pipelined path) with a tiny budget.
    b3, n3 = 32, 64                        # 2N = 128 lanes exactly
    pts3 = jax.random.normal(k3, (b3, n3, 2), dtype=jnp.float32)
    out3 = jax.block_until_ready(
        point_coder_forward(pts3, input_size=8, patch_count=n3,
                            weights=(1.0, 1.0, 1.0), tanh=True,
                            target_block_bytes=8 * 128 * 4))
    ref3 = _reference_forward(pts3, patch_count=n3,
                              weights=(1.0, 1.0, 1.0), tanh=True)
    assert jnp.allclose(out3, ref3, atol=1e-6, rtol=1e-5)

    # 4) bf16 I/O (halved HBM traffic), f32 compute inside the kernel.
    b4, n4 = 16, 196
    pts4 = jax.random.normal(k4, (b4, n4, 2), dtype=jnp.bfloat16)
    out4 = jax.block_until_ready(
        point_coder_forward(pts4, input_size=14, patch_count=n4,
                            weights=(1.0, 1.0, 1.0), tanh=True))
    ref4 = _reference_forward(pts4, patch_count=n4,
                              weights=(1.0, 1.0, 1.0), tanh=True)
    assert out4.dtype == jnp.bfloat16
    assert jnp.allclose(out4.astype(jnp.float32), ref4.astype(jnp.float32),
                        atol=2e-2, rtol=2e-2)

    print("KERNEL_OK")
</pallas_src>

<mosaic_0001>
module attributes {stable_mosaic.version = 11 : i64} {
  func.func @_pointcoder_kernel(%arg0: i32, %arg1: i32, %arg2: memref<2x128xf32, #tpu.memory_space<vmem>>, %arg3: memref<1x128xf32, #tpu.memory_space<vmem>>, %arg4: memref<1x128xf32, #tpu.memory_space<vmem>>, %arg5: memref<2x128xf32, #tpu.memory_space<vmem>>) attributes {dimension_semantics = [#tpu.dimension_semantics<parallel>, #tpu.dimension_semantics<parallel>], iteration_bounds = array<i64: 1, 1>, scalar_prefetch = 0 : i64, scratch_operands = 0 : i64, tpu.core_type = #tpu.core_type<tc>, window_params = [{transform_indices = @transform_0, window_bounds = array<i64: 2, 128>}, {transform_indices = @transform_1, window_bounds = array<i64: 1, 128>}, {transform_indices = @transform_2, window_bounds = array<i64: 1, 128>}, {transform_indices = @transform_3, window_bounds = array<i64: 2, 128>}]} {
    %c0 = arith.constant 0 : index
    %c0_0 = arith.constant 0 : index
    %0 = vector.load %arg2[%c0, %c0_0] : memref<2x128xf32, #tpu.memory_space<vmem>>, vector<2x128xf32>
    %c0_1 = arith.constant 0 : index
    %c0_2 = arith.constant 0 : index
    %1 = vector.load %arg3[%c0_1, %c0_2] : memref<1x128xf32, #tpu.memory_space<vmem>>, vector<1x128xf32>
    %2 = vector.broadcast %1 : vector<1x128xf32> to vector<2x128xf32>
    %3 = arith.mulf %0, %2 : vector<2x128xf32>
    %4 = math.tanh %3 : vector<2x128xf32>
    %cst = arith.constant 1.250000e-01 : f32
    %5 = vector.broadcast %cst : f32 to vector<2x128xf32>
    %6 = arith.mulf %4, %5 : vector<2x128xf32>
    %c0_3 = arith.constant 0 : index
    %c0_4 = arith.constant 0 : index
    %7 = vector.load %arg4[%c0_3, %c0_4] : memref<1x128xf32, #tpu.memory_space<vmem>>, vector<1x128xf32>
    %8 = vector.broadcast %7 : vector<1x128xf32> to vector<2x128xf32>
    %9 = arith.addf %6, %8 : vector<2x128xf32>
    %cst_5 = arith.constant -1.000000e+00 : f32
    %cst_6 = arith.constant 1.000000e+00 : f32
    %10 = vector.broadcast %cst_5 : f32 to vector<2x128xf32>
    %11 = arith.maximumf %10, %9 : vector<2x128xf32>
    %12 = vector.broadcast %cst_6 : f32 to vector<2x128xf32>
    %13 = arith.minimumf %12, %11 : vector<2x128xf32>
    %c0_7 = arith.constant 0 : index
    %c0_8 = arith.constant 0 : index
    %14 = vector.load %arg5[%c0_7, %c0_8] : memref<2x128xf32, #tpu.memory_space<vmem>>, vector<2x128xf32>
    tpu.vector_store %arg5[%c0_7, %c0_8], %13 {strides = array<i32>} : memref<2x128xf32, #tpu.memory_space<vmem>>, vector<2x128xf32>,
    return
  }
  func.func @transform_0(%arg0: i32, %arg1: i32) -> (i32, i32) {
    %c0_i32 = arith.constant 0 : i32
    return %arg0, %arg1 : i32, i32
  }
  func.func @transform_1(%arg0: i32, %arg1: i32) -> (i32, i32) {
    %c0_i32 = arith.constant 0 : i32
    %c0_i32_0 = arith.constant 0 : i32
    return %c0_i32, %arg1 : i32, i32
  }
  func.func @transform_2(%arg0: i32, %arg1: i32) -> (i32, i32) {
    %c0_i32 = arith.constant 0 : i32
    %c0_i32_0 = arith.constant 0 : i32
    return %c0_i32, %arg1 : i32, i32
  }
  func.func @transform_3(%arg0: i32, %arg1: i32) -> (i32, i32) {
    %c0_i32 = arith.constant 0 : i32
    return %arg0, %arg1 : i32, i32
  }
}

</mosaic_0001>

<bundles_post_ra>
// kernel: tpu_custom_call.1
= control target key start
LH: loop header
LB: loop body
LE: loop exit
PB: predicated region body
PF: predicated region fallthrough
CT: control target
= control target key end

     0   :  { %8 = vsyncpa [#allocation3], 0  ;;  %s149_s0 = inlined_call_operand.hbm [shape: f32[2,128], index: 0, kind: input, shape index: {}]   ;;  %s150_s1 = inlined_call_operand.vmem [shape: f32[1,128], index: 1, kind: input, shape index: {}]   ;;  %s151_s2 = inlined_call_operand.vmem [shape: f32[1,128], index: 2, kind: input, shape index: {}]   ;;  %s152_s3 = inlined_call_operand.hbm [shape: f32[2,128], index: 3, kind: output, shape index: {}]  }
   0x1   :  { %9 = vsyncpa [#allocation4], 0  ;;  %s115_s12 = smov [#allocation2]  }
   0x2   :  { %s16_s13 = sshll.u32 %s115_s12, 4  ;;  %s17_s13 = int_to_ptr.vmem [resolvable:$true] %s16_s13 }
   0x3   :  { %s79_s14 = scalar_lea.vmem %s17_s13, 32  ;;  %p84_p1 = scmp.lt.s32.totalorder %s17_s13, %s17_s13 }
   0x4   :  { %p80_p0 = scmp.ne.s32.totalorder %s17_s13, %s79_s14  ;;  %p85_p2 = scmp.lt.s32.totalorder %s79_s14, %s79_s14 }
   0x6   :  { %p86_p3 = por %p85_p2, %p84_p1 }
   0x8   :  { %p87_p4 = pnand %p86_p3, %p80_p0 }
   0xa   :  { %90 = shalt.err (!%p87_p4)
}
   0xb   :  { %19 = dma.hbm_to_vmem [thread:$0]  %s149_s0, 32, %s17_s13, [#allocation3]  }
   0xc   :  { %111 = dma.done.wait [#allocation3], 32  }
   0xd   :  { %112 = vsyncadd [#allocation3], 4294967264  ;;  %v27_v0 = vld [vmem:[#allocation2] sm:$0x3]  ;;  %s116_s21 = smov [#allocation5]  }
   0xe   :  { %v64_v1 = vld [vmem:[%s150_s1] ss:$0 sm:$0xff]  ;;  %s55_s22 = sshll.u32 %s116_s21, 4  ;;  %s56_s22 = int_to_ptr.vmem [resolvable:$true] %s55_s22 }
   0xf   :  { %v35_v2 = vmul.f32 %v64_v1, %v27_v0  ;;  %v65_v4 = vld [vmem:[%s151_s2] ss:$0 sm:$0xff]  ;;  %s91_s0 = scalar_lea.vmem %s56_s22, 32  ;;  %p96_p6 = scmp.lt.s32.totalorder %s56_s22, %s56_s22 }
  0x10   :  { %p92_p5 = scmp.ne.s32.totalorder %s56_s22, %s91_s0  ;;  %p97_p7 = scmp.lt.s32.totalorder %s91_s0, %s91_s0 }
  0x11   :  { %69 = vtanh.f32 %v35_v2 }
  0x12   :  { %p98_p8 = por %p97_p7, %p96_p6 }
  0x14   :  { %p99_p9 = pnand %p98_p8, %p92_p5 }
  0x1e   :  { %v70_v3 = vpop.eup %69 }
  0x1f   :  { %v37_v5 = vmul.f32 0.125, %v70_v3 }
  0x21   :  { %v45_v6 = vadd.f32 %v65_v4, %v37_v5 }
  0x23   :  { %v66_v7 = vclamps-f32 %v45_v6, 1.0 }
  0x25   :  { %48 = vst [vmem:[#allocation5] sm:$0x3] %v66_v7 }
  0x26   :  { %102 = shalt.err (!%p99_p9)
}
  0x27   :  { %58 = dma.vmem_to_hbm [thread:$0]  %s56_s22, 32, %s152_s3, [#allocation4]  }
  0x28   :  { %113 = dma.done.wait [#allocation4], 32  }
  0x29   :  { %114 = vsyncadd [#allocation4], 4294967264 }
  0x2a   :  { %62 = vsyncpa [#allocation3], 1 }
  0x2b   :  { %63 = vsyncpa [#allocation4], 1 }

</bundles_post_ra>
